<compile_context>
chip_gen: v7x
topology: tpu7x:2x2x1
jax: 0.10.0
libtpu: 0.0.40
codegen_flags: <defaults>
</compile_context>

<pallas_src>
import functools

import jax
import jax.numpy as jnp
from jax.experimental import pallas as pl
from jax.experimental.pallas import tpu as pltpu

_LANES = 128
_SUBLANES = 8
_MAX_BIN_BLOCK_ROWS = 4096   # (4096,128) f32 = 2 MiB/buffer; 2 in * 2 bufs + acc ~ 10 MiB
_MAX_MC_TILE_ROWS = 2048
_N_SPLIT = 2                 # leading "parallel" axis -> sharded across TCs on v7x


def _cdiv(a, b):
    return -(-a // b)


def _focal_weight(omp, gamma):
    """(1 - pt) ** gamma, with omp = 1 - pt.

    Integer gamma (the default 2.0) is expanded into VPU multiplies; general float
    gamma falls back to a guarded exp(gamma * log(.)).
    """
    g = float(gamma)
    if g == int(g) and 0 <= int(g) <= 8:
        gi = int(g)
        if gi == 0:
            return jnp.ones_like(omp)
        w = omp
        for _ in range(gi - 1):
            w = w * omp
        return w
    safe = jnp.where(omp > 0.0, omp, 1.0)
    return jnp.where(omp > 0.0, jnp.exp(g * jnp.log(safe)), 0.0)


# ----------------------------------------------------------------------------
# Binary path: F.binary_cross_entropy_with_logits -> focal -> mean/sum
# ----------------------------------------------------------------------------
def _binary_focal_kernel(x_ref, t_ref, out_ref, acc_ref, *, gamma, n_rows_full, n_rem):
    i = pl.program_id(0)
    j = pl.program_id(1)
    steps = pl.num_programs(1)

    @pl.when(j == 0)
    def _():
        acc_ref[...] = jnp.zeros_like(acc_ref)

    x = x_ref[...].astype(jnp.float32)
    t = t_ref[...].astype(jnp.float32)
    rows, lanes = x.shape

    # Numerically stable BCE-with-logits (torch formula):
    #   max(x, 0) - x * t + log1p(exp(-|x|))
    bce = jnp.maximum(x, 0.0) - x * t + jnp.log1p(jnp.exp(-jnp.abs(x)))
    pt = jnp.exp(-bce)
    focal = _focal_weight(1.0 - pt, gamma) * bce

    # blk is the *unclamped* block index; the duplicated (clamped) block of the
    # megacore split and the ragged boundary block are both masked through it.
    blk = i * steps + j
    row0 = blk * rows
    fully_valid = (row0 + rows) <= n_rows_full

    @pl.when(fully_valid)
    def _():
        # Fast path: pure VPU accumulate, no mask work.
        acc_ref[...] += focal

    @pl.when(jnp.logical_not(fully_valid))
    def _():
        row_g = row0 + jax.lax.broadcasted_iota(jnp.int32, (rows, lanes), 0)
        if n_rem:
            lane = jax.lax.broadcasted_iota(jnp.int32, (rows, lanes), 1)
            mask = (row_g < n_rows_full) | ((row_g == n_rows_full) & (lane < n_rem))
        else:
            mask = row_g < n_rows_full
        acc_ref[...] += jnp.where(mask, focal, 0.0)

    @pl.when(j == steps - 1)
    def _():
        out_ref[...] = jnp.full(out_ref.shape, jnp.sum(acc_ref[...]), jnp.float32)


def binary_focal_loss(logits, target, *, gamma=2.0, size_average=True,
                      max_block_rows=_MAX_BIN_BLOCK_ROWS):
    if target.dtype == jnp.bool_:
        target = target.astype(logits.dtype)
    if target.shape != logits.shape:
        # Mirrors torch: target.view(-1, 1) when batch dims differ, then broadcast.
        # TODO(synk): broadcast inside the kernel (per-row BlockSpec) to avoid this copy.
        if logits.shape[0] != target.shape[0]:
            target = target.reshape(-1, 1)
        target = jnp.broadcast_to(target, logits.shape)

    n = logits.size
    x = logits.reshape(-1)
    t = target.reshape(-1)

    # Only pad to lane (128) alignment; the row axis stays ragged and is handled by
    # Pallas partial boundary blocks + in-kernel masking.
    n_aligned = _cdiv(n, _LANES) * _LANES
    if n_aligned != n:
        x = jnp.pad(x, (0, n_aligned - n))
        t = jnp.pad(t, (0, n_aligned - n))
    rows = n_aligned // _LANES

    max_block_rows = max(_SUBLANES, (max_block_rows // _SUBLANES) * _SUBLANES)
    # Single exact block when it fits; otherwise a sublane-aligned block with a
    # partial boundary block at the end.
    block_rows = rows if rows <= max_block_rows else max_block_rows
    num_blocks = _cdiv(rows, block_rows)
    n_split = min(_N_SPLIT, num_blocks)
    steps = _cdiv(num_blocks, n_split)

    x = x.reshape(rows, _LANES)
    t = t.reshape(rows, _LANES)

    kernel = functools.partial(
        _binary_focal_kernel, gamma=float(gamma),
        n_rows_full=n // _LANES, n_rem=n % _LANES)

    def idx(i, j):
        # Clamp: when num_blocks is not a multiple of n_split, the trailing grid point
        # re-reads the last block; its contribution is masked to zero in-kernel.
        return (jnp.minimum(i * steps + j, num_blocks - 1), 0)

    out = pl.pallas_call(
        kernel,
        out_shape=jax.ShapeDtypeStruct((n_split, _SUBLANES, _LANES), jnp.float32),
        grid_spec=pltpu.PrefetchScalarGridSpec(
            num_scalar_prefetch=0,
            grid=(n_split, steps),
            in_specs=[
                pl.BlockSpec((block_rows, _LANES), idx),
                pl.BlockSpec((block_rows, _LANES), idx),
            ],
            out_specs=pl.BlockSpec((1, _SUBLANES, _LANES), lambda i, j: (i, 0, 0)),
            scratch_shapes=[pltpu.VMEM((block_rows, _LANES), jnp.float32)],
        ),
        compiler_params=pltpu.CompilerParams(
            dimension_semantics=("parallel", "arbitrary"),
            vmem_limit_bytes=32 * 1024 * 1024,
        ),
    )(x, t)

    total = jnp.sum(out[:, 0, 0])
    return total / n if size_average else total


# ----------------------------------------------------------------------------
# Multi-class path: F.cross_entropy -> focal -> mean/sum
# ----------------------------------------------------------------------------
def _mc_focal_kernel(z_ref, l_ref, out_ref, acc_ref, *, gamma, n_valid):
    i = pl.program_id(0)

    @pl.when(i == 0)
    def _():
        acc_ref[...] = jnp.zeros_like(acc_ref)

    z = z_ref[...].astype(jnp.float32)       # (tile_n, C)
    labels = l_ref[...]                      # (tile_n, 1) int32
    tile_n, c = z.shape

    zmax = jnp.max(z, axis=-1, keepdims=True)
    lse = zmax + jnp.log(jnp.sum(jnp.exp(z - zmax), axis=-1, keepdims=True))
    # Select target logit via lane-iota == label (no materialized one-hot input).
    lane = jax.lax.broadcasted_iota(jnp.int32, (tile_n, c), 1)
    tgt = jnp.sum(jnp.where(lane == labels, z, 0.0), axis=-1, keepdims=True)
    ce = lse - tgt                           # (tile_n, 1)
    pt = jnp.exp(-ce)
    focal = _focal_weight(1.0 - pt, gamma) * ce

    # Mask ragged / partial-block rows in-kernel (no padding, no mask input stream).
    row = jax.lax.broadcasted_iota(jnp.int32, (tile_n, 1), 0)
    valid = (i * tile_n + row) < n_valid
    acc_ref[...] += jnp.where(valid, focal, 0.0)

    @pl.when(i == pl.num_programs(0) - 1)
    def _():
        out_ref[...] = jnp.full(out_ref.shape, jnp.sum(acc_ref[...]), jnp.float32)


def multiclass_focal_loss(logits, target, *, gamma=2.0, size_average=True,
                          max_tile_rows=_MAX_MC_TILE_ROWS):
    # logits: (N, C), target: (N,) int class indices
    n, c = logits.shape
    labels = target.astype(jnp.int32).reshape(n, 1)

    # tile_n: as large as possible (amortize step overhead) within a ~2 MiB/buffer budget.
    budget_rows = max(_SUBLANES,
                      ((2 * 1024 * 1024) // (4 * c)) // _SUBLANES * _SUBLANES)
    max_tile_rows = max(_SUBLANES, (max_tile_rows // _SUBLANES) * _SUBLANES)
    cap = min(max_tile_rows, budget_rows)    # multiple of 8
    tile_n = n if n <= cap else cap          # exact single block, or 8-aligned tiles
    steps = _cdiv(n, tile_n)

    kernel = functools.partial(_mc_focal_kernel, gamma=float(gamma), n_valid=n)

    out = pl.pallas_call(
        kernel,
        out_shape=jax.ShapeDtypeStruct((1, 1), jnp.float32),
        grid_spec=pltpu.PrefetchScalarGridSpec(
            num_scalar_prefetch=0,
            grid=(steps,),
            in_specs=[
                pl.BlockSpec((tile_n, c), lambda i: (i, 0)),
                pl.BlockSpec((tile_n, 1), lambda i: (i, 0)),
            ],
            out_specs=pl.BlockSpec((1, 1), lambda i: (0, 0)),
            scratch_shapes=[pltpu.VMEM((tile_n, 1), jnp.float32)],
        ),
        compiler_params=pltpu.CompilerParams(dimension_semantics=("arbitrary",)),
    )(logits, labels)

    total = out[0, 0]
    return total / n if size_average else total


class FocalLoss:
    """JAX/Pallas port of the PyTorch FocalLoss module (forward pass)."""

    def __init__(self, gamma=2.0, alpha=None, size_average=True, multi_class=False):
        self.gamma = gamma
        self.alpha = alpha  # accepted but unused, matching the torch forward
        self.size_average = size_average
        self.multi_class = multi_class

    def __call__(self, inp, target):
        if self.multi_class:
            return multiclass_focal_loss(
                inp, target, gamma=self.gamma, size_average=self.size_average
            )
        return binary_focal_loss(
            inp, target, gamma=self.gamma, size_average=self.size_average
        )


# ----------------------------------------------------------------------------
# Pure-JAX references (correctness checking only)
# ----------------------------------------------------------------------------
def _ref_binary(logits, target, gamma=2.0, size_average=True):
    logits = logits.astype(jnp.float32)
    target = jnp.broadcast_to(target.astype(jnp.float32), logits.shape)
    bce = (jnp.maximum(logits, 0.0) - logits * target
           + jnp.log1p(jnp.exp(-jnp.abs(logits))))
    pt = jnp.exp(-bce)
    fl = (1.0 - pt) ** gamma * bce
    return fl.mean() if size_average else fl.sum()


def _ref_multiclass(logits, target, gamma=2.0, size_average=True):
    logits = logits.astype(jnp.float32)
    logp = jax.nn.log_softmax(logits, axis=-1)
    ce = -jnp.take_along_axis(logp, target[:, None], axis=-1)[:, 0]
    pt = jnp.exp(-ce)
    fl = (1.0 - pt) ** gamma * ce
    return fl.mean() if size_average else fl.sum()


if __name__ == "__main__":
    key = jax.random.PRNGKey(0)
    k1, k2, k3, k4, k5, k6, k7, k8 = jax.random.split(key, 8)

    # ---- binary (default module config), lane-aligned NCHW ----
    x = jax.random.normal(k1, (2, 4, 16, 16), dtype=jnp.float32)
    t = jax.random.bernoulli(k2, 0.5, (2, 4, 16, 16)).astype(jnp.float32)

    loss_fn = FocalLoss(gamma=2.0, size_average=True, multi_class=False)
    out = jax.block_until_ready(loss_fn(x, t))
    ref = _ref_binary(x, t)
    assert jnp.allclose(out, ref, rtol=1e-5, atol=1e-6), (out, ref)

    # sum reduction sanity check
    loss_fn_sum = FocalLoss(gamma=2.0, size_average=False, multi_class=False)
    out_s = jax.block_until_ready(loss_fn_sum(x, t))
    ref_s = _ref_binary(x, t, size_average=False)
    assert jnp.allclose(out_s, ref_s, rtol=1e-5, atol=1e-5), (out_s, ref_s)

    # ---- binary, non-lane-aligned shape (exercises in-kernel tail masking) ----
    xr = jax.random.normal(k3, (3, 5, 7, 9), dtype=jnp.float32)
    tr = jax.random.bernoulli(k4, 0.5, (3, 5, 7, 9)).astype(jnp.float32)
    out_r = jax.block_until_ready(
        binary_focal_loss(xr, tr, gamma=2.0, size_average=True))
    ref_r = _ref_binary(xr, tr)
    assert jnp.allclose(out_r, ref_r, rtol=1e-5, atol=1e-6), (out_r, ref_r)

    # ---- binary, multi-block + megacore split + clamped duplicate block ----
    xm = jax.random.normal(k5, (2, 4, 16, 20), dtype=jnp.float32)   # 2560 elems -> 20 rows
    tm = jax.random.bernoulli(k6, 0.5, (2, 4, 16, 20)).astype(jnp.float32)
    out_m = jax.block_until_ready(
        binary_focal_loss(xm, tm, gamma=2.0, size_average=True, max_block_rows=8))
    ref_m = _ref_binary(xm, tm)
    assert jnp.allclose(out_m, ref_m, rtol=1e-5, atol=1e-6), (out_m, ref_m)

    # ---- multi-class path ----
    zc = jax.random.normal(k7, (16, 8), dtype=jnp.float32)
    tc = jax.random.randint(k8, (16,), 0, 8)
    loss_fn_mc = FocalLoss(gamma=2.0, size_average=True, multi_class=True)
    out_mc = jax.block_until_ready(loss_fn_mc(zc, tc))
    ref_mc = _ref_multiclass(zc, tc)
    assert jnp.allclose(out_mc, ref_mc, rtol=1e-5, atol=1e-6), (out_mc, ref_mc)

    # ---- multi-class, ragged rows across multiple tiles ----
    zc2 = jax.random.normal(k3, (30, 8), dtype=jnp.float32)
    tc2 = jax.random.randint(k4, (30,), 0, 8)
    out_mc2 = jax.block_until_ready(
        multiclass_focal_loss(zc2, tc2, gamma=2.0, size_average=True, max_tile_rows=8))
    ref_mc2 = _ref_multiclass(zc2, tc2)
    assert jnp.allclose(out_mc2, ref_mc2, rtol=1e-5, atol=1e-6), (out_mc2, ref_mc2)

    print("KERNEL_OK")
</pallas_src>

<mosaic_0001>
module attributes {stable_mosaic.version = 11 : i64} {
  func.func @_binary_focal_kernel(%arg0: i32, %arg1: i32, %arg2: memref<16x128xf32, #tpu.memory_space<vmem>>, %arg3: memref<16x128xf32, #tpu.memory_space<vmem>>, %arg4: memref<1x8x128xf32, #tpu.memory_space<vmem>>, %arg5: memref<16x128xf32, #tpu.memory_space<vmem>>) attributes {dimension_semantics = [#tpu.dimension_semantics<parallel>, #tpu.dimension_semantics<arbitrary>], iteration_bounds = array<i64: 1, 1>, scalar_prefetch = 0 : i64, scratch_operands = 1 : i64, tpu.core_type = #tpu.core_type<tc>, window_params = [{transform_indices = @transform_0, window_bounds = array<i64: 16, 128>}, {transform_indices = @transform_1, window_bounds = array<i64: 16, 128>}, {transform_indices = @transform_2, window_bounds = array<i64: 1, 8, 128>}]} {
    %c0_i32 = arith.constant 0 : i32
    %0 = arith.cmpi eq, %arg1, %c0_i32 : i32
    %1 = arith.extui %0 : i1 to i32
    %c0_i32_0 = arith.constant 0 : i32
    %2 = arith.cmpi ne, %1, %c0_i32_0 : i32
    scf.if %2 {
      %cst_13 = arith.constant 0.000000e+00 : f32
      %35 = vector.broadcast %cst_13 : f32 to vector<16x128xf32>
      %c0_14 = arith.constant 0 : index
      %c0_15 = arith.constant 0 : index
      %36 = vector.load %arg5[%c0_14, %c0_15] : memref<16x128xf32, #tpu.memory_space<vmem>>, vector<16x128xf32>
      tpu.vector_store %arg5[%c0_14, %c0_15], %35 {strides = array<i32>} : memref<16x128xf32, #tpu.memory_space<vmem>>, vector<16x128xf32>,
    } else {
    }
    %c0 = arith.constant 0 : index
    %c0_1 = arith.constant 0 : index
    %3 = vector.load %arg2[%c0, %c0_1] : memref<16x128xf32, #tpu.memory_space<vmem>>, vector<16x128xf32>
    %c0_2 = arith.constant 0 : index
    %c0_3 = arith.constant 0 : index
    %4 = vector.load %arg3[%c0_2, %c0_3] : memref<16x128xf32, #tpu.memory_space<vmem>>, vector<16x128xf32>
    %cst = arith.constant 0.000000e+00 : f32
    %5 = vector.broadcast %cst : f32 to vector<16x128xf32>
    %6 = arith.maximumf %3, %5 : vector<16x128xf32>
    %7 = arith.mulf %3, %4 : vector<16x128xf32>
    %8 = arith.subf %6, %7 : vector<16x128xf32>
    %9 = math.absf %3 : vector<16x128xf32>
    %cst_4 = arith.constant 0.000000e+00 : f32
    %10 = vector.broadcast %cst_4 : f32 to vector<16x128xf32>
    %11 = arith.subf %10, %9 : vector<16x128xf32>
    %12 = math.exp %11 : vector<16x128xf32>
    %13 = math.log1p %12 : vector<16x128xf32>
    %14 = arith.addf %8, %13 : vector<16x128xf32>
    %cst_5 = arith.constant 0.000000e+00 : f32
    %15 = vector.broadcast %cst_5 : f32 to vector<16x128xf32>
    %16 = arith.subf %15, %14 : vector<16x128xf32>
    %17 = math.exp %16 : vector<16x128xf32>
    %cst_6 = arith.constant 1.000000e+00 : f32
    %18 = vector.broadcast %cst_6 : f32 to vector<16x128xf32>
    %19 = arith.subf %18, %17 : vector<16x128xf32>
    %20 = arith.mulf %19, %19 : vector<16x128xf32>
    %21 = arith.mulf %20, %14 : vector<16x128xf32>
    %c1_i32 = arith.constant 1 : i32
    %22 = arith.muli %arg0, %c1_i32 : i32
    %23 = arith.addi %22, %arg1 : i32
    %c16_i32 = arith.constant 16 : i32
    %24 = arith.muli %23, %c16_i32 : i32
    %c16_i32_7 = arith.constant 16 : i32
    %25 = arith.addi %24, %c16_i32_7 : i32
    %c16_i32_8 = arith.constant 16 : i32
    %26 = arith.cmpi sle, %25, %c16_i32_8 : i32
    %27 = arith.extui %26 : i1 to i32
    %c0_i32_9 = arith.constant 0 : i32
    %28 = arith.cmpi ne, %27, %c0_i32_9 : i32
    scf.if %28 {
      %c0_13 = arith.constant 0 : index
      %c0_14 = arith.constant 0 : index
      %35 = vector.load %arg5[%c0_13, %c0_14] : memref<16x128xf32, #tpu.memory_space<vmem>>, vector<16x128xf32>
      %36 = arith.addf %35, %21 : vector<16x128xf32>
      %c0_15 = arith.constant 0 : index
      %c0_16 = arith.constant 0 : index
      %37 = vector.load %arg5[%c0_15, %c0_16] : memref<16x128xf32, #tpu.memory_space<vmem>>, vector<16x128xf32>
      tpu.vector_store %arg5[%c0_15, %c0_16], %36 {strides = array<i32>} : memref<16x128xf32, #tpu.memory_space<vmem>>, vector<16x128xf32>,
    } else {
    }
    %true = arith.constant true
    %29 = arith.xori %26, %true : i1
    %30 = arith.extui %29 : i1 to i32
    %c0_i32_10 = arith.constant 0 : i32
    %31 = arith.cmpi ne, %30, %c0_i32_10 : i32
    scf.if %31 {
      %35 = tpu.iota {dimensions = array<i32: 0>} : vector<16x128xi32>
      %36 = vector.broadcast %24 : i32 to vector<16x128xi32>
      %37 = arith.addi %36, %35 : vector<16x128xi32>
      %c16_i32_13 = arith.constant 16 : i32
      %38 = vector.broadcast %c16_i32_13 : i32 to vector<16x128xi32>
      %39 = arith.cmpi slt, %37, %38 : vector<16x128xi32>
      %c0_14 = arith.constant 0 : index
      %c0_15 = arith.constant 0 : index
      %40 = vector.load %arg5[%c0_14, %c0_15] : memref<16x128xf32, #tpu.memory_space<vmem>>, vector<16x128xf32>
      %cst_16 = arith.constant 0.000000e+00 : f32
      %41 = vector.broadcast %cst_16 : f32 to vector<16x128xf32>
      %42 = arith.select %39, %21, %41 : vector<16x128xi1>, vector<16x128xf32>
      %43 = arith.addf %40, %42 : vector<16x128xf32>
      %c0_17 = arith.constant 0 : index
      %c0_18 = arith.constant 0 : index
      %44 = vector.load %arg5[%c0_17, %c0_18] : memref<16x128xf32, #tpu.memory_space<vmem>>, vector<16x128xf32>
      tpu.vector_store %arg5[%c0_17, %c0_18], %43 {strides = array<i32>} : memref<16x128xf32, #tpu.memory_space<vmem>>, vector<16x128xf32>,
    } else {
    }
    %c0_i32_11 = arith.constant 0 : i32
    %32 = arith.cmpi eq, %arg1, %c0_i32_11 : i32
    %33 = arith.extui %32 : i1 to i32
    %c0_i32_12 = arith.constant 0 : i32
    %34 = arith.cmpi ne, %33, %c0_i32_12 : i32
    scf.if %34 {
      %c0_13 = arith.constant 0 : index
      %c0_14 = arith.constant 0 : index
      %35 = vector.load %arg5[%c0_13, %c0_14] : memref<16x128xf32, #tpu.memory_space<vmem>>, vector<16x128xf32>
      %36 = vector.shape_cast %35 : vector<16x128xf32> to vector<1x16x128xf32>
      %cst_15 = arith.constant dense<0.000000e+00> : vector<1xf32>
      %37 = vector.multi_reduction <add>, %36, %cst_15 [1, 2] : vector<1x16x128xf32> to vector<1xf32>
      %38 = vector.shape_cast %37 : vector<1xf32> to vector<1x1x1xf32>
      %39 = vector.extract %38[0, 0, 0] : f32 from vector<1x1x1xf32>
      %40 = vector.broadcast %39 : f32 to vector<1x8x128xf32>
      %c0_16 = arith.constant 0 : index
      %c0_17 = arith.constant 0 : index
      %c0_18 = arith.constant 0 : index
      %41 = vector.load %arg4[%c0_16, %c0_17, %c0_18] : memref<1x8x128xf32, #tpu.memory_space<vmem>>, vector<1x8x128xf32>
      tpu.vector_store %arg4[%c0_16, %c0_17, %c0_18], %40 {strides = array<i32>} : memref<1x8x128xf32, #tpu.memory_space<vmem>>, vector<1x8x128xf32>,
    } else {
    }
    return
  }
  func.func @transform_0(%arg0: i32, %arg1: i32) -> (i32, i32) {
    %c1_i32 = arith.constant 1 : i32
    %0 = arith.muli %arg0, %c1_i32 : i32
    %1 = arith.addi %0, %arg1 : i32
    %c0_i32 = arith.constant 0 : i32
    %2 = arith.minsi %1, %c0_i32 : i32
    %c0_i32_0 = arith.constant 0 : i32
    %c0_i32_1 = arith.constant 0 : i32
    return %2, %c0_i32_0 : i32, i32
  }
  func.func @transform_1(%arg0: i32, %arg1: i32) -> (i32, i32) {
    %c1_i32 = arith.constant 1 : i32
    %0 = arith.muli %arg0, %c1_i32 : i32
    %1 = arith.addi %0, %arg1 : i32
    %c0_i32 = arith.constant 0 : i32
    %2 = arith.minsi %1, %c0_i32 : i32
    %c0_i32_0 = arith.constant 0 : i32
    %c0_i32_1 = arith.constant 0 : i32
    return %2, %c0_i32_0 : i32, i32
  }
  func.func @transform_2(%arg0: i32, %arg1: i32) -> (i32, i32, i32) {
    %c0_i32 = arith.constant 0 : i32
    %c0_i32_0 = arith.constant 0 : i32
    %c0_i32_1 = arith.constant 0 : i32
    return %arg0, %c0_i32, %c0_i32_0 : i32, i32, i32
  }
}

</mosaic_0001>

<bundles_post_ra>
// kernel: tpu_custom_call.1
= control target key start
LH: loop header
LB: loop body
LE: loop exit
PB: predicated region body
PF: predicated region fallthrough
CT: control target
= control target key end

     0   :  { %7 = vsyncpa [#allocation4], 0  ;;  %s333_s0 = inlined_call_operand.hbm [shape: f32[16,128], index: 0, kind: input, shape index: {}]   ;;  %s334_s1 = inlined_call_operand.hbm [shape: f32[16,128], index: 1, kind: input, shape index: {}]   ;;  %s335_s2 = inlined_call_operand.hbm [shape: f32[1,8,128], index: 2, kind: output, shape index: {}]  }
   0x1   :  { %8 = vsyncpa [#allocation7], 0 }
   0x2   :  { %9 = vsyncpa [#allocation5], 0  ;;  %s277_s9 = smov [#allocation3]   ;;  %s205_s13 = scalar_lea.hbm %s333_s0, 256 }
   0x3   :  { %s21_s10 = sshll.u32 %s277_s9, 4  ;;  %p206_p0 = scmp.ne.s32.totalorder %s333_s0, %s205_s13  ;;  %s22_s10 = int_to_ptr.vmem [resolvable:$true] %s21_s10 }
   0x4   :  { %p209_p1 = scmp.lt.u32.totalorder %s205_s13, %s333_s0 }
   0x6   :  { %p211_p2 = pnand %p209_p1, %p206_p0 }
   0x8   :  { %214 = shalt.err (!%p211_p2)
}
   0x9   :  { %s215_s18 = scalar_lea.vmem %s22_s10, 256  ;;  %p220_p4 = scmp.lt.s32.totalorder %s22_s10, %s22_s10 }
   0xa   :  { %p216_p3 = scmp.ne.s32.totalorder %s22_s10, %s215_s18  ;;  %p221_p5 = scmp.lt.s32.totalorder %s215_s18, %s215_s18 }
   0xc   :  { %p222_p6 = por %p221_p5, %p220_p4 }
   0xe   :  { %p223_p7 = pnand %p222_p6, %p216_p3 }
  0x10   :  { %226 = shalt.err (!%p223_p7)
}
  0x11   :  { %s278_s19 = smov 128   ;;  %s279_s20 = smov 8  }
  0x12   :  { %27 = dma.hbm_to_vmem [thread:$0]  %s333_s0, 256, %s22_s10, [#allocation4], %s278_s19, %s278_s19, %s279_s20  }
  0x13   :  { %s280_s23 = smov [#allocation6]   ;;  %s227_s27 = scalar_lea.hbm %s334_s1, 256 }
  0x14   :  { %s39_s24 = sshll.u32 %s280_s23, 4  ;;  %p228_p8 = scmp.ne.s32.totalorder %s334_s1, %s227_s27  ;;  %s40_s24 = int_to_ptr.vmem [resolvable:$true] %s39_s24 }
  0x15   :  { %p231_p9 = scmp.lt.u32.totalorder %s227_s27, %s334_s1 }
  0x17   :  { %p233_p10 = pnand %p231_p9, %p228_p8 }
  0x19   :  { %236 = shalt.err (!%p233_p10)
}
  0x1a   :  { %s237_s4 = scalar_lea.vmem %s40_s24, 256  ;;  %p242_p12 = scmp.lt.s32.totalorder %s40_s24, %s40_s24 }
  0x1b   :  { %p238_p11 = scmp.ne.s32.totalorder %s40_s24, %s237_s4  ;;  %p243_p13 = scmp.lt.s32.totalorder %s237_s4, %s237_s4 }
  0x1d   :  { %p244_p0 = por %p243_p13, %p242_p12 }
  0x1f   :  { %p245_p1 = pnand %p244_p0, %p238_p11 }
  0x21   :  { %248 = shalt.err (!%p245_p1)
}
  0x22   :  { %45 = dma.hbm_to_vmem [thread:$0]  %s334_s1, 256, %s40_s24, [#allocation7], %s278_s19, %s278_s19, %s279_s20  }
  0x23   :  { %271 = dma.done.wait [#allocation4], 256  }
  0x24   :  { %272 = vsyncadd [#allocation4], 4294967040 }
  0x25   :  { %273 = dma.done.wait [#allocation7], 256  }
  0x26   :  { %274 = vsyncadd [#allocation7], 4294967040  ;;  %v66_v0 = vld [vmem:[#allocation3] sm:$0xff]  ;;  %v67_v1 = vld [vmem:[#allocation3 + $0x8] sm:$0xff]  ;;  %s281_s1 = smov [#allocation8]  }
  0x27   :  { %v76_v2 = vand.u32 2147483647, %v66_v0  ;;  %v77_v3 = vand.u32 2147483647, %v67_v1  ;;  %v68_v14 = vld [vmem:[#allocation6] sm:$0xff]  ;;  %v69_v15 = vld [vmem:[#allocation6 + $0x8] sm:$0xff] }
  0x28   :  { %v70_v17 = vmax.f32 %v66_v0, 0.0  ;;  %v72_v18 = vmul.f32 %v68_v14, %v66_v0  ;;  %v71_v21 = vmax.f32 %v67_v1, 0.0  ;;  %v73_v22 = vmul.f32 %v69_v15, %v67_v1  ;;  %s172_s6 = sshll.u32 %s281_s1, 4  ;;  %s173_s6 = int_to_ptr.vmem [resolvable:$true] %s172_s6 }
  0x29   :  { %v78_v4 = vsub.f32 0.0, %v76_v2  ;;  %v79_v5 = vsub.f32 0.0, %v77_v3  ;;  %s249_s8 = scalar_lea.vmem %s173_s6, 128  ;;  %p254_p3 = scmp.lt.s32.totalorder %s173_s6, %s173_s6 }
  0x2a   :  { %v74_v26 = vsub.f32 %v70_v17, %v72_v18  ;;  %v75_v29 = vsub.f32 %v71_v21, %v73_v22  ;;  %p250_p2 = scmp.ne.s32.totalorder %s173_s6, %s249_s8  ;;  %p255_p4 = scmp.lt.s32.totalorder %s249_s8, %s249_s8 }
  0x2b   :  { %v80_v6 = vmul.f32 1.442695, %v78_v4  ;;  %v82_v7 = vmul.f32 1.442695, %v79_v5 }
  0x2c   :  { %p256_p5 = por %p255_p4, %p254_p3 }
  0x2d   :  { %193 = vpow2.f32 %v80_v6 }
  0x2e   :  { %195 = vpow2.f32 %v82_v7  ;;  %p257_p6 = pnand %p256_p5, %p250_p2 }
  0x37   :  { %v194_v8 = vpop.eup %193 }
  0x38   :  { %v196_v9 = vpop.eup %195  ;;  %v84_v10 = vadd.f32 1.0, %v194_v8  ;;  %v87_v12 = vmul.f32 -0.5, %v194_v8  ;;  %v90_v19 = vand.u32 2147483647, %v194_v8 }
  0x39   :  { %v93_v11 = vadd.f32 1.0, %v196_v9  ;;  %v96_v13 = vmul.f32 -0.5, %v196_v9  ;;  %v99_v23 = vand.u32 2147483647, %v196_v9 }
  0x3a   :  { %197 = vlog2.f32 %v84_v10  ;;  %v88_v16 = vadd.f32 1.0, %v87_v12  ;;  %vm91_vm0 = vcmp.lt.f32.partialorder %v90_v19, 0.0004427343 }
  0x3b   :  { %199 = vlog2.f32 %v93_v11  ;;  %v97_v20 = vadd.f32 1.0, %v96_v13  ;;  %vm100_vm1 = vcmp.lt.f32.partialorder %v99_v23, 0.0004427343 }
  0x3c   :  { %v89_v24 = vmul.f32 %v194_v8, %v88_v16 }
  0x3d   :  { %v98_v27 = vmul.f32 %v196_v9, %v97_v20 }
  0x44   :  { %v198_v25 = vpop.eup %197 }
  0x45   :  { %v200_v28 = vpop.eup %199  ;;  %v86_v30 = vmul.f32 0.6931472, %v198_v25 }
  0x46   :  { %v95_v31 = vmul.f32 0.6931472, %v200_v28 }
  0x47   :  { %v92_v32 = vsel %vm91_vm0, %v89_v24, %v86_v30 }
  0x48   :  { %v101_v33 = vsel %vm100_vm1, %v98_v27, %v95_v31  ;;  %v102_v34 = vadd.f32 %v92_v32, %v74_v26 }
  0x49   :  { %v103_v35 = vadd.f32 %v101_v33, %v75_v29 }
  0x4a   :  { %v104_v36 = vsub.f32 0.0, %v102_v34 }
  0x4b   :  { %v105_v37 = vsub.f32 0.0, %v103_v35 }
  0x4c   :  { %v106_v38 = vmul.f32 1.442695, %v104_v36 }
  0x4d   :  { %v108_v39 = vmul.f32 1.442695, %v105_v37 }
  0x4e   :  { %201 = vpow2.f32 %v106_v38 }
  0x4f   :  { %203 = vpow2.f32 %v108_v39 }
  0x58   :  { %v202_v40 = vpop.eup %201 }
  0x59   :  { %v204_v41 = vpop.eup %203  ;;  %v110_v42 = vsub.f32 1.0, %v202_v40 }
  0x5a   :  { %v111_v43 = vsub.f32 1.0, %v204_v41 }
  0x5b   :  { %v112_v44 = vmul.f32 %v110_v42, %v110_v42 }
  0x5c   :  { %v113_v45 = vmul.f32 %v111_v43, %v111_v43 }
  0x5d   :  { %v114_v46 = vmul.f32 %v112_v44, %v102_v34 }
  0x5e   :  { %v115_v47 = vmul.f32 %v113_v45, %v103_v35 }
  0x60   :  { %v154_v48 = vadd.f32 %v115_v47, %v114_v46 }
  0x62   :  { %155 = vadd.xlane.f32.xlu0 %v154_v48 }
  0xef   :  { %v156_v49 = vpop.xlane.xlu0 %155 }
  0xf0   :  { %v157_v50 = vrot.slane %v156_v49, 4 }
  0xf2   :  { %v158_v51 = vadd.f32 %v157_v50, %v156_v49 }
  0xf4   :  { %v159_v52 = vrot.slane %v158_v51, 2 }
  0xf6   :  { %v160_v53 = vadd.f32 %v159_v52, %v158_v51 }
  0xf8   :  { %v161_v54 = vrot.slane %v160_v53, 1 }
  0xfa   :  { %v162_v55 = vadd.f32 %v161_v54, %v160_v53 }
  0xfc   :  { %186 = vpush %v162_v55 }
 0x12d   :  { %s187_s7 = spop %186 }
 0x12e   :  { %v164_v56 = vstv %s187_s7 }
 0x12f   :  { %165 = vst [vmem:[#allocation8] sm:$0xff] %v164_v56 }
 0x130   :  { %260 = shalt.err (!%p257_p6)
}
 0x131   :  { %s261_s11 = scalar_lea.hbm %s335_s2, 128 }
 0x132   :  { %p262_p7 = scmp.ne.s32.totalorder %s335_s2, %s261_s11  ;;  %p265_p8 = scmp.lt.u32.totalorder %s261_s11, %s335_s2 }
 0x134   :  { %p267_p9 = pnand %p265_p8, %p262_p7 }
 0x136   :  { %270 = shalt.err (!%p267_p9)
}
 0x137   :  { %175 = dma.vmem_to_hbm [thread:$0]  %s173_s6, 128, %s335_s2, [#allocation5]  }
 0x138   :  { %275 = dma.done.wait [#allocation5], 128  }
 0x139   :  { %276 = vsyncadd [#allocation5], 4294967168 }
 0x13a   :  { %179 = vsyncpa [#allocation4], 1 }
 0x13b   :  { %180 = vsyncpa [#allocation7], 1 }
 0x13c   :  { %181 = vsyncpa [#allocation5], 1 }

</bundles_post_ra>
